<compile_context>
chip_gen: v7x
topology: tpu7x:2x2x1
jax: 0.10.0
libtpu: 0.0.40
codegen_flags: <defaults>
</compile_context>

<pallas_src>
import functools

import jax
import jax.numpy as jnp
from jax import lax
from jax.experimental import pallas as pl
from jax.experimental.pallas import tpu as pltpu
from jax.scipy.linalg import block_diag

GROUPS = 32                 # se_resnext101_32x4d: groups=32, base_width=4, reduction=16
_STEM_C = 128               # stem output channels zero-padded 64 -> 128 for lane density
_MAX_COL_TILE = 512         # N-tile (lanes) — multiple of 256 (v6e/v7x MXU) = 4x128 (v5e)


def _detect_generation():
    try:
        kind = jax.devices()[0].device_kind.lower()
    except Exception:  # pragma: no cover - defensive
        return "unknown"
    if "v5 lite" in kind or "v5e" in kind or "v5lite" in kind:
        return "v5e"
    if "v6" in kind:
        return "v6e"
    if "v7" in kind or "7x" in kind:
        return "v7x"
    return "unknown"


_GEN = _detect_generation()
if _GEN in ("v5e", "v6e"):
    # 128 MiB physical VMEM: bigger M tiles halve weight re-streaming.
    _MAX_ROW_TILE = 1024
    _VMEM_LIMIT = 96 * 1024 * 1024
else:
    # v7x (64 MiB VMEM) and unknown chips: conservative sizing.
    _MAX_ROW_TILE = 512
    _VMEM_LIMIT = 48 * 1024 * 1024


def _pack_lanes_for(width):
    """Block-diagonal pack width for the grouped conv of a stage of this `width`.

    Inflation is pack_n/og zero-FLOPs per real MAC, so keep 128-lane packs where the
    per-group output og is small (stages 1-2) and always on v5e (128-wide MXU tiles).
    """
    og = width // GROUPS
    if _GEN == "v5e":
        return 128
    return 128 if og < 16 else 256


def _cp(*sems):
    return pltpu.CompilerParams(dimension_semantics=sems, vmem_limit_bytes=_VMEM_LIMIT)


def _row_tile(m):
    return m if m <= _MAX_ROW_TILE else _MAX_ROW_TILE


def _col_tile(n):
    return n if n <= _MAX_COL_TILE else _MAX_COL_TILE


# =====================  Pallas kernels  =====================

def _mm_kernel(x_ref, w_ref, s_ref, b_ref, o_ref, *, act):
    y = jnp.dot(x_ref[...], w_ref[...], preferred_element_type=jnp.float32)
    y = y * s_ref[...] + b_ref[...]
    if act == "relu":
        y = jnp.maximum(y, 0.0)
    elif act == "sigmoid":
        y = jax.nn.sigmoid(y)
    o_ref[...] = y.astype(o_ref.dtype)


@functools.partial(jax.jit, static_argnames=("act", "out_dtype"))
def matmul_scale_bias(x, w, scale, bias, act, out_dtype=jnp.bfloat16):
    """y = act((x @ w) * scale + bias).  x:(M,K) bf16, w:(K,N) bf16, scale/bias:(N,) f32."""
    M, K = x.shape
    N = w.shape[1]
    tm, tn = _row_tile(M), _col_tile(N)
    grid = (pl.cdiv(M, tm), pl.cdiv(N, tn))
    return pl.pallas_call(
        functools.partial(_mm_kernel, act=act),
        out_shape=jax.ShapeDtypeStruct((M, N), out_dtype),
        grid=grid,
        in_specs=[
            pl.BlockSpec((tm, K), lambda i, j: (i, 0)),
            pl.BlockSpec((K, tn), lambda i, j: (0, j)),
            pl.BlockSpec((1, tn), lambda i, j: (0, j)),
            pl.BlockSpec((1, tn), lambda i, j: (0, j)),
        ],
        out_specs=pl.BlockSpec((tm, tn), lambda i, j: (i, j)),
        compiler_params=_cp("parallel", "parallel"),
    )(x, w, scale.reshape(1, N), bias.reshape(1, N))


def _gconv_fused_kernel(x_ref, w_ref, s_ref, b_ref, o_ref, *, oh, ow, stride):
    """Fused grouped 3x3 conv + BN + relu for one (batch, pack) grid step.

    x_ref: (1, stride*stride, Hq, Wq, Cpk) phase-decomposed padded input slab.
    w_ref: (1, 9, Cpk, pack_n) per-tap block-diagonal weights.
    The 9 taps are contiguous (unstrided) windows of the phase planes, accumulated on
    the MXU in f32 — no im2col patches ever touch HBM.
    """
    m = oh * ow
    cpk = x_ref.shape[-1]
    pack_n = w_ref.shape[-1]
    acc = jnp.zeros((m, pack_n), jnp.float32)
    for ki in range(3):
        for kj in range(3):
            phase = (ki % stride) * stride + (kj % stride)
            r0 = ki // stride
            c0 = kj // stride
            xt = x_ref[0, phase, r0:r0 + oh, c0:c0 + ow, :]
            acc = acc + jnp.dot(xt.reshape(m, cpk), w_ref[0, ki * 3 + kj],
                                preferred_element_type=jnp.float32)
    y = acc * s_ref[...] + b_ref[...]
    o_ref[0] = jnp.maximum(y, 0.0).astype(o_ref.dtype)


@functools.partial(jax.jit, static_argnames=("stride",))
def grouped_conv3x3_bn_relu(x, wp, scale, bias, stride):
    """Grouped 3x3 conv + BN + relu, halo-fused (no HBM im2col).

    x:(B,H,W,Cin) bf16; wp:(n_packs, 9, Cpk, pack_n) bf16 per-tap block-diagonal packed
    weights; scale/bias:(Cout,) f32.  stride in {1, 2}; for stride 2 the padded input is
    phase-decomposed (space-to-depth) with a single ~1x HBM copy so every tap is a
    contiguous window.
    """
    B, H, W, Cin = x.shape
    n_packs, ntaps, cpk, pack_n = wp.shape
    cout = n_packs * pack_n
    assert Cin == n_packs * cpk, (Cin, n_packs, cpk)
    assert cpk % 128 == 0 or cpk == Cin, cpk
    xpad = jnp.pad(x, ((0, 0), (1, 1), (1, 1), (0, 0)))
    if stride == 1:
        OH, OW = H, W
        xph = xpad.reshape(B, 1, H + 2, W + 2, Cin)          # free reshape
    else:
        assert H % 2 == 0 and W % 2 == 0, "stride-2 grouped conv assumes even H, W"
        OH, OW = H // 2, W // 2
        Hq, Wq = (H + 2) // 2, (W + 2) // 2
        xph = (xpad.reshape(B, Hq, 2, Wq, 2, Cin)
               .transpose(0, 2, 4, 1, 3, 5)                  # one ~1x HBM copy
               .reshape(B, 4, Hq, Wq, Cin))
    ph = stride * stride
    Hq, Wq = xph.shape[2], xph.shape[3]
    M = OH * OW
    y = pl.pallas_call(
        functools.partial(_gconv_fused_kernel, oh=OH, ow=OW, stride=stride),
        out_shape=jax.ShapeDtypeStruct((B, M, cout), jnp.bfloat16),
        grid=(B, n_packs),
        in_specs=[
            pl.BlockSpec((1, ph, Hq, Wq, cpk), lambda b, p: (b, 0, 0, 0, p)),
            pl.BlockSpec((1, ntaps, cpk, pack_n), lambda b, p: (p, 0, 0, 0)),
            pl.BlockSpec((1, pack_n), lambda b, p: (0, p)),
            pl.BlockSpec((1, pack_n), lambda b, p: (0, p)),
        ],
        out_specs=pl.BlockSpec((1, M, pack_n), lambda b, p: (b, 0, p)),
        compiler_params=_cp("parallel", "parallel"),
    )(xph, wp, scale.reshape(1, cout), bias.reshape(1, cout))
    return y.reshape(B, OH, OW, cout)


def _conv_pool_kernel(x_ref, w_ref, s_ref, b_ref, y_ref, p_ref, *, hw, thw):
    i = pl.program_id(2)
    y = jnp.dot(x_ref[0], w_ref[...], preferred_element_type=jnp.float32)
    y = y * s_ref[...] + b_ref[...]
    # NOTE: on a partial final HW tile the rows beyond `hw` are garbage but Pallas clips
    # the partial-block store; they are masked below before entering the pool sum.
    y_ref[0] = y.astype(y_ref.dtype)
    if hw % thw != 0:  # static
        row = i * thw + lax.broadcasted_iota(jnp.int32, (thw, 1), 0)
        y = jnp.where(row < hw, y, 0.0)

    @pl.when(i == 0)
    def _():
        p_ref[...] = jnp.zeros_like(p_ref)

    p_ref[...] += jnp.sum(y, axis=0, keepdims=True) * (1.0 / hw)


@jax.jit
def conv1x1_bn_pool(x, w, scale, bias):
    """Fused 1x1 conv + BN (no act) + per-image global average pool (SE squeeze).

    The pooled block stays VMEM-resident across the innermost ("arbitrary") HW axis; the
    (Cin, Cout) weight is kept fully resident (single Cout step) whenever it fits, so the
    conv3 input streams from HBM exactly once.
    """
    B, HW, Cin = x.shape
    Cout = w.shape[1]
    thw = _row_tile(HW)
    tn = Cout if Cin * Cout * 2 <= (8 << 20) else _col_tile(Cout)
    grid = (B, pl.cdiv(Cout, tn), pl.cdiv(HW, thw))
    return pl.pallas_call(
        functools.partial(_conv_pool_kernel, hw=HW, thw=thw),
        out_shape=(jax.ShapeDtypeStruct((B, HW, Cout), jnp.bfloat16),
                   jax.ShapeDtypeStruct((B, Cout), jnp.float32)),
        grid=grid,
        in_specs=[
            pl.BlockSpec((1, thw, Cin), lambda b, j, i: (b, i, 0)),
            pl.BlockSpec((Cin, tn), lambda b, j, i: (0, j)),
            pl.BlockSpec((1, tn), lambda b, j, i: (0, j)),
            pl.BlockSpec((1, tn), lambda b, j, i: (0, j)),
        ],
        out_specs=(pl.BlockSpec((1, thw, tn), lambda b, j, i: (b, i, j)),
                   pl.BlockSpec((1, tn), lambda b, j, i: (b, j))),
        compiler_params=_cp("parallel", "parallel", "arbitrary"),
    )(x, w, scale.reshape(1, Cout), bias.reshape(1, Cout))


def _se_fc_kernel(p_ref, w1_ref, b1_ref, w2_ref, b2_ref, g_ref):
    h = jnp.dot(p_ref[...], w1_ref[...], preferred_element_type=jnp.float32) + b1_ref[...]
    h = jnp.maximum(h, 0.0)                      # h stays in VMEM
    g = jnp.dot(h, w2_ref[...], preferred_element_type=jnp.float32) + b2_ref[...]
    g_ref[...] = jax.nn.sigmoid(g)


@jax.jit
def se_gate(pooled, w1, b1, w2, b2):
    """Fused SE head: sigmoid(relu(pooled @ w1 + b1) @ w2 + b2), all f32, one launch."""
    B, C = pooled.shape
    red = w1.shape[1]
    return pl.pallas_call(
        _se_fc_kernel,
        out_shape=jax.ShapeDtypeStruct((B, C), jnp.float32),
        grid=(1,),
        in_specs=[
            pl.BlockSpec((B, C), lambda i: (0, 0)),
            pl.BlockSpec((C, red), lambda i: (0, 0)),
            pl.BlockSpec((1, red), lambda i: (0, 0)),
            pl.BlockSpec((red, C), lambda i: (0, 0)),
            pl.BlockSpec((1, C), lambda i: (0, 0)),
        ],
        out_specs=pl.BlockSpec((B, C), lambda i: (0, 0)),
        compiler_params=_cp("arbitrary"),
    )(pooled, w1, b1.reshape(1, red), w2, b2.reshape(1, C))


def _se_kernel(x_ref, g_ref, r_ref, o_ref):
    y = x_ref[0].astype(jnp.float32) * g_ref[...] + r_ref[0].astype(jnp.float32)
    o_ref[0] = jnp.maximum(y, 0.0).astype(o_ref.dtype)


@jax.jit
def se_scale_add_relu(x, gate, residual):
    """relu(x * sigmoid_gate + residual).  x,residual:(B,HW,C) bf16, gate:(B,C) f32."""
    B, HW, C = x.shape
    thw, tc = _row_tile(HW), _col_tile(C)
    grid = (B, pl.cdiv(HW, thw), pl.cdiv(C, tc))
    return pl.pallas_call(
        _se_kernel,
        out_shape=jax.ShapeDtypeStruct((B, HW, C), jnp.bfloat16),
        grid=grid,
        in_specs=[
            pl.BlockSpec((1, thw, tc), lambda b, i, j: (b, i, j)),
            pl.BlockSpec((1, tc), lambda b, i, j: (b, j)),
            pl.BlockSpec((1, thw, tc), lambda b, i, j: (b, i, j)),
        ],
        out_specs=pl.BlockSpec((1, thw, tc), lambda b, i, j: (b, i, j)),
        compiler_params=_cp("parallel", "parallel", "parallel"),
    )(x, gate, residual)


def _gap_kernel(x_ref, o_ref, *, hw, thw):
    i = pl.program_id(2)
    xv = x_ref[0].astype(jnp.float32)
    if hw % thw != 0:
        row = i * thw + lax.broadcasted_iota(jnp.int32, (thw, 1), 0)
        xv = jnp.where(row < hw, xv, 0.0)

    @pl.when(i == 0)
    def _():
        o_ref[...] = jnp.zeros_like(o_ref)

    o_ref[...] += jnp.sum(xv, axis=0, keepdims=True) * (1.0 / hw)


@jax.jit
def global_avg_pool(x):
    """x:(B,HW,C) bf16 -> (B,C) f32 mean over HW (== F.avg_pool2d(kernel=(h,w)))."""
    B, HW, C = x.shape
    thw, tc = _row_tile(HW), _col_tile(C)
    grid = (B, pl.cdiv(C, tc), pl.cdiv(HW, thw))
    return pl.pallas_call(
        functools.partial(_gap_kernel, hw=HW, thw=thw),
        out_shape=jax.ShapeDtypeStruct((B, C), jnp.float32),
        grid=grid,
        in_specs=[pl.BlockSpec((1, thw, tc), lambda b, j, i: (b, i, j))],
        out_specs=pl.BlockSpec((1, tc), lambda b, j, i: (b, j)),
        compiler_params=_cp("parallel", "parallel", "arbitrary"),
    )(x)


def _maxpool_kernel(x_ref, o_ref, *, oh, ow):
    """3x3/s2 max over the phase-decomposed padded input; taps are contiguous windows."""
    m = None
    for ki in range(3):
        for kj in range(3):
            phase = (ki % 2) * 2 + (kj % 2)
            t = x_ref[0, phase, ki // 2:ki // 2 + oh, kj // 2:kj // 2 + ow, :]
            m = t if m is None else jnp.maximum(m, t)
    o_ref[0] = m


@jax.jit
def maxpool3x3_s2_ceil(x):
    """MaxPool2d(3, stride=2, ceil_mode=True) without the HBM tap stack."""
    B, H, W, C = x.shape
    k, s = 3, 2
    OH = -(-(H - k) // s) + 1
    OW = -(-(W - k) // s) + 1
    Hp, Wp = 2 * OH + 2, 2 * OW + 2        # even, covers all taps; extra rows are -inf
    xpad = jnp.pad(x, ((0, 0), (0, Hp - H), (0, Wp - W), (0, 0)),
                   constant_values=-jnp.inf)
    Hq, Wq = Hp // 2, Wp // 2
    xph = (xpad.reshape(B, Hq, 2, Wq, 2, C)
           .transpose(0, 2, 4, 1, 3, 5)
           .reshape(B, 4, Hq, Wq, C))      # one ~1x HBM copy (vs 9x tap stack before)
    return pl.pallas_call(
        functools.partial(_maxpool_kernel, oh=OH, ow=OW),
        out_shape=jax.ShapeDtypeStruct((B, OH, OW, C), x.dtype),
        grid=(B,),
        in_specs=[pl.BlockSpec((1, 4, Hq, Wq, C), lambda b: (b, 0, 0, 0, 0))],
        out_specs=pl.BlockSpec((1, OH, OW, C), lambda b: (b, 0, 0, 0)),
        compiler_params=_cp("parallel"),
    )(xph)


# =====================  JAX glue (stem im2col, layers)  =====================

def _im2col(x, k, stride, pad):
    """x:(B,H,W,C) bf16 -> patches (B*OH*OW, k*k*C), K ordering (kh, kw, cin): no transpose."""
    B, H, W, C = x.shape
    xp = jnp.pad(x, ((0, 0), (pad, pad), (pad, pad), (0, 0)))
    OH = (H + 2 * pad - k) // stride + 1
    OW = (W + 2 * pad - k) // stride + 1
    taps = [xp[:, i:i + (OH - 1) * stride + 1:stride,
               j:j + (OW - 1) * stride + 1:stride, :]
            for i in range(k) for j in range(k)]
    p = jnp.stack(taps, axis=3)           # (B, OH, OW, k*k, C)
    return p.reshape(B * OH * OW, k * k * C), OH, OW


@functools.partial(jax.jit, static_argnames=("act", "stride", "ksize", "pad"))
def conv_bn(x, w_kn, scale, bias, act, stride=1, ksize=1, pad=0):
    """Conv (no bias) + folded BN (+ optional act) via Pallas matmul."""
    B, H, W, Cin = x.shape
    if ksize == 1:
        # TODO(synk): express the stride in the BlockSpec instead of this strided-slice copy.
        xs = x if stride == 1 else x[:, ::stride, ::stride, :]
        _, OH, OW, _ = xs.shape
        patches = xs.reshape(B * OH * OW, Cin)
    else:
        # TODO(synk): the stem 7x7 still im2cols in HBM (Cin=3, small absolute traffic).
        patches, OH, OW = _im2col(x, ksize, stride, pad)
    y = matmul_scale_bias(patches, w_kn, scale, bias, act)
    return y.reshape(B, OH, OW, -1)


def bottleneck(x, p):
    """SEResNeXtBottleneck: 1x1 -> grouped 3x3(stride) -> 1x1 -> SE -> +residual -> relu."""
    out = conv_bn(x, p["w1"], p["s1"], p["b1"], "relu")
    out = grouped_conv3x3_bn_relu(out, p["w2p"], p["s2"], p["b2"], p["stride"])
    B, OH, OW, width = out.shape
    HW = OH * OW
    # conv3 + BN fused with the SE squeeze (global average pool).
    y, pooled = conv1x1_bn_pool(out.reshape(B, HW, width), p["w3"], p["s3"], p["b3"])
    C = y.shape[-1]
    if "wd" in p:
        residual = conv_bn(x, p["wd"], p["sd"], p["bd"], "none", stride=p["stride"])
    else:
        residual = x
    gate = se_gate(pooled, p["fc1_w"], p["fc1_b"], p["fc2_w"], p["fc2_b"])  # fused SE FCs (f32)
    z = se_scale_add_relu(y, gate, residual.reshape(B, HW, C))
    return z.reshape(B, OH, OW, C)


# =====================  Parameters (deterministic synthetic init)  =====================

def _pack_grouped_weight_per_tap(w, groups, pack_lanes):
    """Torch (Cout, Cin//G, 3, 3) -> (n_packs, 9, Cpk, pack_n) per-tap block-diagonal packs."""
    cout, cg, kh, kw = w.shape
    assert cout % groups == 0, (cout, groups)
    og = cout // groups
    pack_n = min(pack_lanes, cout)
    assert pack_n % og == 0, (pack_n, og)
    pg = pack_n // og                      # groups per pack
    assert groups % pg == 0, (groups, pg)
    n_packs = groups // pg
    wg = w.reshape(groups, og, cg, kh, kw)
    packs = []
    for pidx in range(n_packs):
        taps = []
        for ki in range(kh):
            for kj in range(kw):
                blocks = [wg[pidx * pg + q, :, :, ki, kj].T for q in range(pg)]  # (cg, og)
                taps.append(block_diag(*blocks))                                 # (pg*cg, pack_n)
        packs.append(jnp.stack(taps, 0))
    wp = jnp.stack(packs, 0).astype(jnp.bfloat16)
    assert wp.shape == (n_packs, kh * kw, pg * cg, pack_n), wp.shape
    return wp


def build_params(num_classes, seed=42):
    key = jax.random.PRNGKey(seed)
    cnt = [0]

    def nrm(shape, std):
        cnt[0] += 1
        return std * jax.random.normal(jax.random.fold_in(key, cnt[0]), shape, jnp.float32)

    def he(shape, fan_in):
        return nrm(shape, (2.0 / fan_in) ** 0.5)

    bf = lambda a: a.astype(jnp.bfloat16)
    ones = lambda n: jnp.ones((n,), jnp.float32)
    zeros = lambda n: jnp.zeros((n,), jnp.float32)

    P = {"num_classes": num_classes}
    # layer0: Conv2d(3, 64, 7, stride=2, padding=3, bias=False) + BN + ReLU + MaxPool(3,2,ceil)
    w = he((64, 3, 7, 7), 3 * 49)
    wk = w.transpose(2, 3, 1, 0).reshape(49 * 3, 64)        # K order (kh, kw, cin)
    P["stem_w"] = bf(jnp.pad(wk, ((0, 0), (0, _STEM_C - 64))))   # pad Cout 64 -> 128 (lane dense)
    P["stem_s"], P["stem_b"] = ones(_STEM_C), zeros(_STEM_C)

    blocks = []
    inplanes, in_pad = 64, _STEM_C
    # se_resnext101_32x4d: layers = [3, 4, 23, 3]
    for planes, nblk, stride in [(64, 3, 1), (128, 4, 2), (256, 23, 2), (512, 3, 2)]:
        for bi in range(nblk):
            st = stride if bi == 0 else 1
            width = planes * 2               # floor(planes * 4/64) * 32
            outc = planes * 4
            red = outc // 16                 # SE reduction = 16
            p = {"stride": st}
            w1 = he((width, inplanes, 1, 1), inplanes).reshape(width, inplanes).T
            if in_pad != inplanes:           # zero rows for the padded stem channels
                w1 = jnp.pad(w1, ((0, in_pad - inplanes), (0, 0)))
            p["w1"] = bf(w1)
            p["s1"], p["b1"] = ones(width), zeros(width)
            w2 = he((width, width // GROUPS, 3, 3), (width // GROUPS) * 9)   # torch layout
            p["w2p"] = _pack_grouped_weight_per_tap(w2, GROUPS, _pack_lanes_for(width))
            p["s2"], p["b2"] = ones(width), zeros(width)
            p["w3"] = bf(he((outc, width, 1, 1), width).reshape(outc, width).T)
            p["s3"], p["b3"] = ones(outc), zeros(outc)
            # SE FCs kept in f32 (matches the reference precision; review item).
            p["fc1_w"] = nrm((outc, red), (1.0 / outc) ** 0.5)
            p["fc1_b"] = nrm((red,), 0.01)
            p["fc2_w"] = nrm((red, outc), (1.0 / red) ** 0.5)
            p["fc2_b"] = nrm((outc,), 0.01)
            if bi == 0 and (st != 1 or inplanes != outc):
                wd = he((outc, inplanes, 1, 1), inplanes).reshape(outc, inplanes).T
                if in_pad != inplanes:
                    wd = jnp.pad(wd, ((0, in_pad - inplanes), (0, 0)))
                p["wd"] = bf(wd)
                p["sd"], p["bd"] = ones(outc), zeros(outc)
            blocks.append(p)
            inplanes, in_pad = outc, outc
    P["blocks"] = blocks
    # SEResNeXt.fc = nn.Linear(2048, num_classes), N zero-padded to 128 for lane density.
    ncp = max(128, -(-num_classes // 128) * 128)
    fcw = nrm((num_classes, 2048), (1.0 / 2048) ** 0.5).T
    P["fc_w"] = bf(jnp.pad(fcw, ((0, 0), (0, ncp - num_classes))))
    P["fc_b"] = jnp.pad(nrm((num_classes,), 0.01), (0, ncp - num_classes))
    P["fc_s"] = ones(ncp)
    return P


# =====================  Forward (== SENet.forward)  =====================

def seresnext_forward(x_nchw, P):
    x = jnp.transpose(x_nchw, (0, 2, 3, 1)).astype(jnp.bfloat16)   # NCHW -> NHWC, bf16
    # self.features(x)
    x = conv_bn(x, P["stem_w"], P["stem_s"], P["stem_b"], "relu", stride=2, ksize=7, pad=3)
    x = maxpool3x3_s2_ceil(x)
    for p in P["blocks"]:
        x = bottleneck(x, p)
    B, H, W, C = x.shape
    # F.avg_pool2d(x, kernel_size=(h, w)); x.view(b, -1); self.fc(x)
    pooled = global_avg_pool(x.reshape(B, H * W, C))
    logits = matmul_scale_bias(pooled.astype(jnp.bfloat16), P["fc_w"], P["fc_s"], P["fc_b"],
                               "none", out_dtype=jnp.float32)
    return logits[:, :P["num_classes"]]


if __name__ == "__main__":
    num_classes = 10
    params = build_params(num_classes)
    x = jax.random.normal(jax.random.PRNGKey(0), (2, 3, 32, 32), jnp.float32)
    logits = seresnext_forward(x, params)
    logits = jax.block_until_ready(logits)
    assert logits.shape == (2, num_classes), logits.shape
    assert bool(jnp.all(jnp.isfinite(logits)))
    print("KERNEL_OK")
</pallas_src>

<mosaic_0001>
module attributes {stable_mosaic.version = 11 : i64} {
  func.func @_mm_kernel(%arg0: i32, %arg1: i32, %arg2: memref<512x147xbf16, #tpu.memory_space<vmem>>, %arg3: memref<147x128xbf16, #tpu.memory_space<vmem>>, %arg4: memref<1x128xf32, #tpu.memory_space<vmem>>, %arg5: memref<1x128xf32, #tpu.memory_space<vmem>>, %arg6: memref<512x128xbf16, #tpu.memory_space<vmem>>) attributes {dimension_semantics = [#tpu.dimension_semantics<parallel>, #tpu.dimension_semantics<parallel>], iteration_bounds = array<i64: 1, 1>, scalar_prefetch = 0 : i64, scratch_operands = 0 : i64, tpu.core_type = #tpu.core_type<tc>, window_params = [{transform_indices = @transform_0, window_bounds = array<i64: 512, 147>}, {transform_indices = @transform_1, window_bounds = array<i64: 147, 128>}, {transform_indices = @transform_2, window_bounds = array<i64: 1, 128>}, {transform_indices = @transform_3, window_bounds = array<i64: 1, 128>}, {transform_indices = @transform_4, window_bounds = array<i64: 512, 128>}]} {
    %c0 = arith.constant 0 : index
    %c0_0 = arith.constant 0 : index
    %0 = vector.load %arg2[%c0, %c0_0] : memref<512x147xbf16, #tpu.memory_space<vmem>>, vector<512x147xbf16>
    %c0_1 = arith.constant 0 : index
    %c0_2 = arith.constant 0 : index
    %1 = vector.load %arg3[%c0_1, %c0_2] : memref<147x128xbf16, #tpu.memory_space<vmem>>, vector<147x128xbf16>
    %cst = arith.constant dense<0.000000e+00> : vector<512x128xf32>
    %2 = tpu.matmul %0, %1, %cst {dimension_numbers = #tpu.dot_dimension_numbers<[1], [0], [0], [1], [0, 0, 1, 1], [], []>} : vector<512x147xbf16>, vector<147x128xbf16>, vector<512x128xf32> -> vector<512x128xf32>
    %c0_3 = arith.constant 0 : index
    %c0_4 = arith.constant 0 : index
    %3 = vector.load %arg4[%c0_3, %c0_4] : memref<1x128xf32, #tpu.memory_space<vmem>>, vector<1x128xf32>
    %4 = vector.broadcast %3 : vector<1x128xf32> to vector<512x128xf32>
    %5 = arith.mulf %2, %4 : vector<512x128xf32>
    %c0_5 = arith.constant 0 : index
    %c0_6 = arith.constant 0 : index
    %6 = vector.load %arg5[%c0_5, %c0_6] : memref<1x128xf32, #tpu.memory_space<vmem>>, vector<1x128xf32>
    %7 = vector.broadcast %6 : vector<1x128xf32> to vector<512x128xf32>
    %8 = arith.addf %5, %7 : vector<512x128xf32>
    %cst_7 = arith.constant 0.000000e+00 : f32
    %9 = vector.broadcast %cst_7 : f32 to vector<512x128xf32>
    %10 = arith.maximumf %8, %9 : vector<512x128xf32>
    %11 = arith.truncf %10 : vector<512x128xf32> to vector<512x128xbf16>
    %c0_8 = arith.constant 0 : index
    %c0_9 = arith.constant 0 : index
    %12 = vector.load %arg6[%c0_8, %c0_9] : memref<512x128xbf16, #tpu.memory_space<vmem>>, vector<512x128xbf16>
    tpu.vector_store %arg6[%c0_8, %c0_9], %11 {strides = array<i32>} : memref<512x128xbf16, #tpu.memory_space<vmem>>, vector<512x128xbf16>,
    return
  }
  func.func @transform_0(%arg0: i32, %arg1: i32) -> (i32, i32) {
    %c0_i32 = arith.constant 0 : i32
    %c0_i32_0 = arith.constant 0 : i32
    return %arg0, %c0_i32 : i32, i32
  }
  func.func @transform_1(%arg0: i32, %arg1: i32) -> (i32, i32) {
    %c0_i32 = arith.constant 0 : i32
    %c0_i32_0 = arith.constant 0 : i32
    return %c0_i32, %arg1 : i32, i32
  }
  func.func @transform_2(%arg0: i32, %arg1: i32) -> (i32, i32) {
    %c0_i32 = arith.constant 0 : i32
    %c0_i32_0 = arith.constant 0 : i32
    return %c0_i32, %arg1 : i32, i32
  }
  func.func @transform_3(%arg0: i32, %arg1: i32) -> (i32, i32) {
    %c0_i32 = arith.constant 0 : i32
    %c0_i32_0 = arith.constant 0 : i32
    return %c0_i32, %arg1 : i32, i32
  }
  func.func @transform_4(%arg0: i32, %arg1: i32) -> (i32, i32) {
    %c0_i32 = arith.constant 0 : i32
    return %arg0, %arg1 : i32, i32
  }
}

</mosaic_0001>

<bundles_post_ra>
// kernel: matmul_scale_bias.1
= control target key start
LH: loop header
LB: loop body
LE: loop exit
PB: predicated region body
PF: predicated region fallthrough
CT: control target
= control target key end

     0   :  { %v1964_v1 = vmov 0   ;;  %vm447_vm0 = vcmask 154624   ;;  %vm544_vm1 = vcmask 1040384   ;;  %vm545_vm2 = vcmask 1041408   ;;  %s2398_s0 = inlined_call_operand.vmem [shape: bf16[512,147], index: 0, kind: input, shape index: {}]   ;;  %s2399_s1 = inlined_call_operand.vmem [shape: bf16[147,128], index: 1, kind: input, shape index: {}]   ;;  %s2400_s2 = inlined_call_operand.vmem [shape: f32[1,128], index: 2, kind: input, shape index: {}]   ;;  %s2401_s3 = inlined_call_operand.vmem [shape: f32[1,128], index: 3, kind: input, shape index: {}]   ;;  %s2402_s4 = inlined_call_operand.hbm [shape: bf16[512,128], index: 4, kind: output, shape index: {}]  }
   0x1   :  { %v1834_v0 = vld [vmem:[%s2399_s1] sm:$0xff]   ;;  %551 = vmatprep.subr.bf16.mxu0 %v1964_v1  ;;  %1809 = vmatprep.subr.bf16.mxu1 %v1964_v1  ;;  %v1835_v2 = vld [vmem:[%s2399_s1 + $0x8] sm:$0xff]   ;;  %v1836_v3 = vld [vmem:[%s2399_s1 + $0x10] sm:$0xff]   ;;  %v1965_v11 = vmov 65535  }
   0x2   :  { %552 = vmatpush1.bf16.msra.mxu0 %v1834_v0  ;;  %1819 = vmatpush1.bf16.msra.mxu1 %v1834_v0  ;;  %v1837_v4 = vld [vmem:[%s2399_s1 + $0x18] sm:$0xff]   ;;  %v1846_v5 = vld [vmem:[%s2398_s0 + $0x4] ss:$8 sps:$4 sm:$0xff]   ;;  %v1840_v9 = vld [vmem:[%s2399_s1 + $0x30] sm:$0xff]   ;;  %v546_v12 = vsel %vm544_vm1, 4294967295, %v1965_v11 }
   0x3   :  { %553 = vmatprep.subr.bf16.mxu0 %v1964_v1  ;;  %1810 = vmatprep.subr.bf16.mxu1 %v1964_v1  ;;  %v1849_v6 = vld [vmem:[%s2398_s0 + $0x104] ss:$8 sps:$4 sm:$0xff]   ;;  %v1841_v10 = vld [vmem:[%s2399_s1 + $0x38] sm:$0xff]   ;;  %v1843_v14 = vld [vmem:[%s2399_s1 + $0x48] ss:$0 sps:$4 sm:$0x33]  }
   0x4   :  { %1456 = vmatprep.mubr.msk.bf16.mxu0 %vm447_vm0, %v1846_v5  ;;  %v1838_v7 = vld [vmem:[%s2399_s1 + $0x20] sm:$0xff]   ;;  %1472 = vmatprep.mubr.msk.bf16.mxu1 %vm447_vm0, %v1849_v6  ;;  %v1839_v8 = vld [vmem:[%s2399_s1 + $0x28] sm:$0xff]   ;;  %v547_v15 = vsel %vm545_vm2, %v546_v12, 0  ;;  %v1850_v19 = vld [vmem:[%s2398_s0 + $0x14] ss:$8 sps:$4 sm:$0xff]  }
   0x5   :  { %v1842_v13 = vld [vmem:[%s2399_s1 + $0x40] sm:$0xff]   ;;  %v549_v16 = vand.u32 %v1843_v14, %v547_v15  ;;  %v1852_v20 = vld [vmem:[%s2398_s0 + $0x114] ss:$8 sps:$4 sm:$0xff]   ;;  %v1854_v21 = vld [vmem:[%s2398_s0 + $0x10] ss:$8 sps:$4 sm:$0xff]  }
   0x6   :  { %554 = vmatpush1.bf16.msra.mxu0 %v1835_v2  ;;  %1820 = vmatpush1.bf16.msra.mxu1 %v1835_v2  ;;  %v1844_v17 = vld [vmem:[%s2398_s0] ss:$8 sps:$4 sm:$0xff]   ;;  %v1855_v22 = vld [vmem:[%s2398_s0 + $0x110] ss:$8 sps:$4 sm:$0xff]   ;;  %v1856_v23 = vld [vmem:[%s2398_s0 + $0x24] ss:$8 sps:$4 sm:$0xff]  }
   0x7   :  { %555 = vmatprep.subr.bf16.mxu0 %v1964_v1  ;;  %1811 = vmatprep.subr.bf16.mxu1 %v1964_v1  ;;  %v1847_v18 = vld [vmem:[%s2398_s0 + $0x100] ss:$8 sps:$4 sm:$0xff]   ;;  %v1858_v24 = vld [vmem:[%s2398_s0 + $0x124] ss:$8 sps:$4 sm:$0xff]  }
   0xa   :  { %556 = vmatpush1.bf16.msra.mxu0 %v1836_v3  ;;  %1821 = vmatpush1.bf16.msra.mxu1 %v1836_v3 }
   0xb   :  { %557 = vmatprep.subr.bf16.mxu0 %v1964_v1  ;;  %1812 = vmatprep.subr.bf16.mxu1 %v1964_v1 }
   0xe   :  { %558 = vmatpush1.bf16.msra.mxu0 %v1837_v4  ;;  %1822 = vmatpush1.bf16.msra.mxu1 %v1837_v4 }
   0xf   :  { %559 = vmatprep.subr.bf16.mxu0 %v1964_v1  ;;  %1813 = vmatprep.subr.bf16.mxu1 %v1964_v1 }
  0x12   :  { %560 = vmatpush1.bf16.msra.mxu0 %v1838_v7  ;;  %1823 = vmatpush1.bf16.msra.mxu1 %v1838_v7 }
  0x13   :  { %561 = vmatprep.subr.bf16.mxu0 %v1964_v1  ;;  %1814 = vmatprep.subr.bf16.mxu1 %v1964_v1 }
  0x16   :  { %562 = vmatpush1.bf16.msra.mxu0 %v1839_v8  ;;  %1824 = vmatpush1.bf16.msra.mxu1 %v1839_v8 }
  0x17   :  { %563 = vmatprep.subr.bf16.mxu0 %v1964_v1  ;;  %1815 = vmatprep.subr.bf16.mxu1 %v1964_v1 }
  0x1a   :  { %564 = vmatpush1.bf16.msra.mxu0 %v1840_v9  ;;  %1825 = vmatpush1.bf16.msra.mxu1 %v1840_v9 }
  0x1b   :  { %565 = vmatprep.subr.bf16.mxu0 %v1964_v1  ;;  %1816 = vmatprep.subr.bf16.mxu1 %v1964_v1 }
  0x1e   :  { %566 = vmatpush1.bf16.msra.mxu0 %v1841_v10  ;;  %1826 = vmatpush1.bf16.msra.mxu1 %v1841_v10 }
  0x1f   :  { %567 = vmatprep.subr.bf16.mxu0 %v1964_v1  ;;  %1817 = vmatprep.subr.bf16.mxu1 %v1964_v1 }
  0x22   :  { %568 = vmatpush1.bf16.msra.mxu0 %v1842_v13  ;;  %1827 = vmatpush1.bf16.msra.mxu1 %v1842_v13 }
  0x23   :  { %569 = vmatprep.subr.bf16.mxu0 %v1964_v1  ;;  %1818 = vmatprep.subr.bf16.mxu1 %v1964_v1 }
  0x26   :  { %570 = vmatpush1.bf16.msra.mxu0 %v549_v16  ;;  %1828 = vmatpush1.bf16.msra.mxu1 %v549_v16 }
  0x29   :  { %584 = vmatmul.mubr.bf16.vlgmr.msra.gmra.mrb[0].mxu0 %v1844_v17  ;;  %712 = vmatmul.mubr.bf16.vlgmr.msra.gmra.mrb[0].mxu1 %v1847_v18 }
  0x2a   :  { %1457 = vmatprep.mubr.msk.bf16.mxu0 %vm447_vm0, %v1850_v19  ;;  %1473 = vmatprep.mubr.msk.bf16.mxu1 %vm447_vm0, %v1852_v20 }
  0x31   :  { %592 = vmatmul.mubr.bf16.gmra.mrb[4].mxu0 %v1854_v21  ;;  %720 = vmatmul.mubr.bf16.gmra.mrb[4].mxu1 %v1855_v22 }
  0x32   :  { %1458 = vmatprep.mubr.msk.bf16.mxu0 %vm447_vm0, %v1856_v23  ;;  %1474 = vmatprep.mubr.msk.bf16.mxu1 %vm447_vm0, %v1858_v24 }
  0x33   :  { %9 = vsyncpa [#allocation3], 0  ;;  %v1860_v25 = vld [vmem:[%s2398_s0 + $0x20] ss:$8 sps:$4 sm:$0xff]   ;;  %v1862_v27 = vld [vmem:[%s2398_s0 + $0x34] ss:$8 sps:$4 sm:$0xff]  }
  0x34   :  { %v1861_v26 = vld [vmem:[%s2398_s0 + $0x120] ss:$8 sps:$4 sm:$0xff]   ;;  %v1864_v28 = vld [vmem:[%s2398_s0 + $0x134] ss:$8 sps:$4 sm:$0xff]   ;;  %v1866_v29 = vld [vmem:[%s2398_s0 + $0x30] ss:$8 sps:$4 sm:$0xff]  }
  0x35   :  { %v1867_v30 = vld [vmem:[%s2398_s0 + $0x130] ss:$8 sps:$4 sm:$0xff]   ;;  %v1868_v31 = vld [vmem:[%s2398_s0 + $0x44] ss:$8 sps:$4 sm:$0xff]   ;;  %v1872_v33 = vld [vmem:[%s2398_s0 + $0x40] ss:$8 sps:$4 sm:$0xff]  }
  0x36   :  { %v1870_v32 = vld [vmem:[%s2398_s0 + $0x144] ss:$8 sps:$4 sm:$0xff]   ;;  %v1873_v34 = vld [vmem:[%s2398_s0 + $0x140] ss:$8 sps:$4 sm:$0xff]   ;;  %v1874_v35 = vld [vmem:[%s2398_s0 + $0x54] ss:$8 sps:$4 sm:$0xff]  }
  0x37   :  { %v1876_v36 = vld [vmem:[%s2398_s0 + $0x154] ss:$8 sps:$4 sm:$0xff]   ;;  %v1878_v37 = vld [vmem:[%s2398_s0 + $0x50] ss:$8 sps:$4 sm:$0xff]   ;;  %v1880_v39 = vld [vmem:[%s2398_s0 + $0x64] ss:$8 sps:$4 sm:$0xff]  }
  0x38   :  { %v1879_v38 = vld [vmem:[%s2398_s0 + $0x150] ss:$8 sps:$4 sm:$0xff]   ;;  %v1882_v40 = vld [vmem:[%s2398_s0 + $0x164] ss:$8 sps:$4 sm:$0xff]   ;;  %v1884_v41 = vld [vmem:[%s2398_s0 + $0x60] ss:$8 sps:$4 sm:$0xff]  }
  0x39   :  { %600 = vmatmul.mubr.bf16.gmra.mrb[8].mxu0 %v1860_v25  ;;  %728 = vmatmul.mubr.bf16.gmra.mrb[8].mxu1 %v1861_v26  ;;  %v1885_v42 = vld [vmem:[%s2398_s0 + $0x160] ss:$8 sps:$4 sm:$0xff]   ;;  %v1886_v43 = vld [vmem:[%s2398_s0 + $0x74] ss:$8 sps:$4 sm:$0xff]   ;;  %v1890_v45 = vld [vmem:[%s2398_s0 + $0x70] ss:$8 sps:$4 sm:$0xff]  }
  0x3a   :  { %1459 = vmatprep.mubr.msk.bf16.mxu0 %vm447_vm0, %v1862_v27  ;;  %1475 = vmatprep.mubr.msk.bf16.mxu1 %vm447_vm0, %v1864_v28  ;;  %v1888_v44 = vld [vmem:[%s2398_s0 + $0x174] ss:$8 sps:$4 sm:$0xff]   ;;  %v1891_v46 = vld [vmem:[%s2398_s0 + $0x170] ss:$8 sps:$4 sm:$0xff]   ;;  %v1892_v47 = vld [vmem:[%s2398_s0 + $0x84] ss:$8 sps:$4 sm:$0xff]  }
  0x3b   :  { %v1894_v48 = vld [vmem:[%s2398_s0 + $0x184] ss:$8 sps:$4 sm:$0xff]   ;;  %v1896_v49 = vld [vmem:[%s2398_s0 + $0x80] ss:$8 sps:$4 sm:$0xff]   ;;  %v1898_v51 = vld [vmem:[%s2398_s0 + $0x94] ss:$8 sps:$4 sm:$0xff]  }
  0x3c   :  { %v1897_v50 = vld [vmem:[%s2398_s0 + $0x180] ss:$8 sps:$4 sm:$0xff]   ;;  %v1900_v52 = vld [vmem:[%s2398_s0 + $0x194] ss:$8 sps:$4 sm:$0xff]   ;;  %v1902_v53 = vld [vmem:[%s2398_s0 + $0x90] ss:$8 sps:$4 sm:$0xff]  }
  0x3d   :  { %v1903_v54 = vld [vmem:[%s2398_s0 + $0x190] ss:$8 sps:$4 sm:$0xff]   ;;  %v1904_v55 = vld [vmem:[%s2398_s0 + $0xa4] ss:$8 sps:$4 sm:$0xff]   ;;  %v1908_v57 = vld [vmem:[%s2398_s0 + $0xa0] ss:$8 sps:$4 sm:$0xff]  }
  0x3e   :  { %v1906_v56 = vld [vmem:[%s2398_s0 + $0x1a4] ss:$8 sps:$4 sm:$0xff]   ;;  %v1909_v58 = vld [vmem:[%s2398_s0 + $0x1a0] ss:$8 sps:$4 sm:$0xff]   ;;  %v1910_v59 = vld [vmem:[%s2398_s0 + $0xb4] ss:$8 sps:$4 sm:$0xff]  }
  0x3f   :  { %v1912_v60 = vld [vmem:[%s2398_s0 + $0x1b4] ss:$8 sps:$4 sm:$0xff]   ;;  %v1914_v61 = vld [vmem:[%s2398_s0 + $0xb0] ss:$8 sps:$4 sm:$0xff]   ;;  %v1916_v63 = vld [vmem:[%s2398_s0 + $0xc4] ss:$8 sps:$4 sm:$0xff]  }
  0x40   :  { %v1915_v62 = vld [vmem:[%s2398_s0 + $0x1b0] ss:$8 sps:$4 sm:$0xff]   ;;  %v1918_v0 = vld [vmem:[%s2398_s0 + $0x1c4] ss:$8 sps:$4 sm:$0xff]   ;;  %v1920_v1 = vld [vmem:[%s2398_s0 + $0xc0] ss:$8 sps:$4 sm:$0xff]  }
  0x41   :  { %608 = vmatmul.mubr.bf16.gmra.mrb[12].mxu0 %v1866_v29  ;;  %736 = vmatmul.mubr.bf16.gmra.mrb[12].mxu1 %v1867_v30  ;;  %v1921_v2 = vld [vmem:[%s2398_s0 + $0x1c0] ss:$8 sps:$4 sm:$0xff]   ;;  %v1922_v3 = vld [vmem:[%s2398_s0 + $0xd4] ss:$8 sps:$4 sm:$0xff]   ;;  %v1926_v5 = vld [vmem:[%s2398_s0 + $0xd0] ss:$8 sps:$4 sm:$0xff]  }
  0x42   :  { %1460 = vmatprep.mubr.msk.bf16.mxu0 %vm447_vm0, %v1868_v31  ;;  %1476 = vmatprep.mubr.msk.bf16.mxu1 %vm447_vm0, %v1870_v32  ;;  %v1924_v4 = vld [vmem:[%s2398_s0 + $0x1d4] ss:$8 sps:$4 sm:$0xff]   ;;  %v1927_v6 = vld [vmem:[%s2398_s0 + $0x1d0] ss:$8 sps:$4 sm:$0xff]   ;;  %v1928_v7 = vld [vmem:[%s2398_s0 + $0xe4] ss:$8 sps:$4 sm:$0xff]  }
  0x43   :  { %v1930_v8 = vld [vmem:[%s2398_s0 + $0x1e4] ss:$8 sps:$4 sm:$0xff]   ;;  %v1932_v9 = vld [vmem:[%s2398_s0 + $0xe0] ss:$8 sps:$4 sm:$0xff]   ;;  %v1934_v11 = vld [vmem:[%s2398_s0 + $0xf4] ss:$8 sps:$4 sm:$0xff]  }
  0x44   :  { %v1933_v10 = vld [vmem:[%s2398_s0 + $0x1e0] ss:$8 sps:$4 sm:$0xff]   ;;  %v1936_v12 = vld [vmem:[%s2398_s0 + $0x1f4] ss:$8 sps:$4 sm:$0xff]   ;;  %v1938_v13 = vld [vmem:[%s2398_s0 + $0xf0] ss:$8 sps:$4 sm:$0xff]  }
  0x45   :  { %v1939_v14 = vld [vmem:[%s2398_s0 + $0x1f0] ss:$8 sps:$4 sm:$0xff]   ;;  %v2251_v15 = vld [vmem:[%s2400_s2] ss:$0 sm:$0xff]  ;;  %s1966_s0 = smov [#allocation2]  }
  0x46   :  { %v2256_v17 = vld [vmem:[%s2401_s3] ss:$0 sm:$0xff]  ;;  %s1371_s2 = sshll.u32 %s1966_s0, 4  ;;  %s1372_s2 = int_to_ptr.vmem [resolvable:$true] %s1371_s2 }
  0x47   :  { %s1940_s3 = scalar_lea.vmem %s1372_s2, 4096  ;;  %p1945_p1 = scmp.lt.s32.totalorder %s1372_s2, %s1372_s2 }
  0x48   :  { %p1941_p0 = scmp.ne.s32.totalorder %s1372_s2, %s1940_s3  ;;  %p1946_p2 = scmp.lt.s32.totalorder %s1940_s3, %s1940_s3 }
  0x49   :  { %616 = vmatmul.mubr.bf16.gmra.mrb[16].mxu0 %v1872_v33  ;;  %744 = vmatmul.mubr.bf16.gmra.mrb[16].mxu1 %v1873_v34 }
  0x4a   :  { %1461 = vmatprep.mubr.msk.bf16.mxu0 %vm447_vm0, %v1874_v35  ;;  %1477 = vmatprep.mubr.msk.bf16.mxu1 %vm447_vm0, %v1876_v36  ;;  %p1947_p3 = por %p1946_p2, %p1945_p1 }
  0x4c   :  { %p1948_p4 = pnand %p1947_p3, %p1941_p0 }
  0x51   :  { %624 = vmatmul.mubr.bf16.gmra.mrb[20].mxu0 %v1878_v37  ;;  %752 = vmatmul.mubr.bf16.gmra.mrb[20].mxu1 %v1879_v38 }
  0x52   :  { %1462 = vmatprep.mubr.msk.bf16.mxu0 %vm447_vm0, %v1880_v39  ;;  %1478 = vmatprep.mubr.msk.bf16.mxu1 %vm447_vm0, %v1882_v40 }
  0x59   :  { %632 = vmatmul.mubr.bf16.gmra.mrb[24].mxu0 %v1884_v41  ;;  %760 = vmatmul.mubr.bf16.gmra.mrb[24].mxu1 %v1885_v42 }
  0x5a   :  { %1463 = vmatprep.mubr.msk.bf16.mxu0 %vm447_vm0, %v1886_v43  ;;  %1479 = vmatprep.mubr.msk.bf16.mxu1 %vm447_vm0, %v1888_v44 }
  0x61   :  { %640 = vmatmul.mubr.bf16.gmra.mrb[28].mxu0 %v1890_v45  ;;  %768 = vmatmul.mubr.bf16.gmra.mrb[28].mxu1 %v1891_v46 }
  0x62   :  { %1464 = vmatprep.mubr.msk.bf16.mxu0 %vm447_vm0, %v1892_v47  ;;  %1480 = vmatprep.mubr.msk.bf16.mxu1 %vm447_vm0, %v1894_v48 }
  0x69   :  { %648 = vmatmul.mubr.bf16.gmra.mrb[32].mxu0 %v1896_v49  ;;  %776 = vmatmul.mubr.bf16.gmra.mrb[32].mxu1 %v1897_v50 }
  0x6a   :  { %1465 = vmatprep.mubr.msk.bf16.mxu0 %vm447_vm0, %v1898_v51  ;;  %1481 = vmatprep.mubr.msk.bf16.mxu1 %vm447_vm0, %v1900_v52 }
  0x71   :  { %656 = vmatmul.mubr.bf16.gmra.mrb[36].mxu0 %v1902_v53  ;;  %784 = vmatmul.mubr.bf16.gmra.mrb[36].mxu1 %v1903_v54 }
  0x72   :  { %1466 = vmatprep.mubr.msk.bf16.mxu0 %vm447_vm0, %v1904_v55  ;;  %1482 = vmatprep.mubr.msk.bf16.mxu1 %vm447_vm0, %v1906_v56 }
  0x79   :  { %664 = vmatmul.mubr.bf16.gmra.mrb[40].mxu0 %v1908_v57  ;;  %792 = vmatmul.mubr.bf16.gmra.mrb[40].mxu1 %v1909_v58 }
  0x7a   :  { %1467 = vmatprep.mubr.msk.bf16.mxu0 %vm447_vm0, %v1910_v59  ;;  %1483 = vmatprep.mubr.msk.bf16.mxu1 %vm447_vm0, %v1912_v60 }
  0x81   :  { %672 = vmatmul.mubr.bf16.gmra.mrb[44].mxu0 %v1914_v61  ;;  %800 = vmatmul.mubr.bf16.gmra.mrb[44].mxu1 %v1915_v62 }
  0x82   :  { %1468 = vmatprep.mubr.msk.bf16.mxu0 %vm447_vm0, %v1916_v63  ;;  %1484 = vmatprep.mubr.msk.bf16.mxu1 %vm447_vm0, %v1918_v0 }
  0x89   :  { %680 = vmatmul.mubr.bf16.gmra.mrb[48].mxu0 %v1920_v1  ;;  %808 = vmatmul.mubr.bf16.gmra.mrb[48].mxu1 %v1921_v2 }
  0x8a   :  { %1469 = vmatprep.mubr.msk.bf16.mxu0 %vm447_vm0, %v1922_v3  ;;  %1485 = vmatprep.mubr.msk.bf16.mxu1 %vm447_vm0, %v1924_v4 }
  0x91   :  { %688 = vmatmul.mubr.bf16.gmra.mrb[52].mxu0 %v1926_v5  ;;  %816 = vmatmul.mubr.bf16.gmra.mrb[52].mxu1 %v1927_v6 }
  0x92   :  { %1470 = vmatprep.mubr.msk.bf16.mxu0 %vm447_vm0, %v1928_v7  ;;  %1486 = vmatprep.mubr.msk.bf16.mxu1 %vm447_vm0, %v1930_v8 }
  0x99   :  { %696 = vmatmul.mubr.bf16.gmra.mrb[56].mxu0 %v1932_v9  ;;  %824 = vmatmul.mubr.bf16.gmra.mrb[56].mxu1 %v1933_v10 }
  0x9a   :  { %1471 = vmatprep.mubr.msk.bf16.mxu0 %vm447_vm0, %v1934_v11  ;;  %1487 = vmatprep.mubr.msk.bf16.mxu1 %vm447_vm0, %v1936_v12 }
  0xa1   :  { %704 = vmatmul.mubr.bf16.gmra.mrb[60].mxu0 %v1938_v13  ;;  %832 = vmatmul.mubr.bf16.gmra.mrb[60].mxu1 %v1939_v14 }
  0xfc   :  { %v585_v16 = vpop.f32.mrb[0].mxu0  ;;  %v713_v18 = vpop.f32.mrb[0].mxu1 }
  0xfd   :  { %v847_v19 = vmul.f32 %v2251_v15, %v585_v16  ;;  %v879_v20 = vmul.f32 %v2251_v15, %v713_v18  ;;  %v587_v21 = vpop.f32.mrb[1].mxu0  ;;  %v715_v22 = vpop.f32.mrb[1].mxu1 }
  0xfe   :  { %v588_v23 = vpop.f32.mrb[2].mxu0  ;;  %v716_v24 = vpop.f32.mrb[2].mxu1 }
  0xff   :  { %v918_v25 = vadd.f32 %v2256_v17, %v847_v19  ;;  %v950_v26 = vadd.f32 %v2256_v17, %v879_v20  ;;  %v848_v27 = vmul.f32 %v2251_v15, %v588_v23  ;;  %v880_v28 = vmul.f32 %v2251_v15, %v716_v24  ;;  %v590_v29 = vpop.f32.mrb[3].mxu0  ;;  %v718_v30 = vpop.f32.mrb[3].mxu1 }
 0x101   :  { %v919_v31 = vadd.f32 %v2256_v17, %v848_v27  ;;  %v951_v32 = vadd.f32 %v2256_v17, %v880_v28  ;;  %v982_v33 = vmax.f32 %v918_v25, 0.0  ;;  %v1014_v34 = vmax.f32 %v950_v26, 0.0 }
 0x103   :  { %v983_v35 = vmax.f32 %v919_v31, 0.0  ;;  %v1015_v36 = vmax.f32 %v951_v32, 0.0 }
 0x104   :  { %v593_v37 = vpop.f32.mrb[4].mxu0  ;;  %v721_v38 = vpop.f32.mrb[4].mxu1 }
 0x105   :  { %v1621_v39 = vpack.c.bf16 %v983_v35, %v982_v33  ;;  %v1701_v40 = vpack.c.bf16 %v1015_v36, %v1014_v34  ;;  %v849_v41 = vmul.f32 %v2251_v15, %v593_v37  ;;  %v881_v42 = vmul.f32 %v2251_v15, %v721_v38  ;;  %v595_v43 = vpop.f32.mrb[5].mxu0  ;;  %v723_v44 = vpop.f32.mrb[5].mxu1 }
 0x106   :  { %v596_v45 = vpop.f32.mrb[6].mxu0  ;;  %v724_v46 = vpop.f32.mrb[6].mxu1 }
 0x107   :  { %1622 = vst [vmem:[#allocation2] sm:$0xff] %v1621_v39   ;;  %1793 = vst [vmem:[#allocation2 + $0x80] sm:$0xff] %v1701_v40   ;;  %v920_v47 = vadd.f32 %v2256_v17, %v849_v41  ;;  %v952_v48 = vadd.f32 %v2256_v17, %v881_v42  ;;  %v850_v49 = vmul.f32 %v2251_v15, %v596_v45  ;;  %v598_v51 = vpop.f32.mrb[7].mxu0  ;;  %v726_v52 = vpop.f32.mrb[7].mxu1 }
 0x108   :  { %v882_v50 = vmul.f32 %v2251_v15, %v724_v46 }
 0x109   :  { %v921_v53 = vadd.f32 %v2256_v17, %v850_v49  ;;  %v984_v55 = vmax.f32 %v920_v47, 0.0  ;;  %v1016_v56 = vmax.f32 %v952_v48, 0.0 }
 0x10a   :  { %v953_v54 = vadd.f32 %v2256_v17, %v882_v50 }
 0x10b   :  { %v985_v57 = vmax.f32 %v921_v53, 0.0 }
 0x10c   :  { %v1017_v58 = vmax.f32 %v953_v54, 0.0  ;;  %v601_v59 = vpop.f32.mrb[8].mxu0  ;;  %v729_v60 = vpop.f32.mrb[8].mxu1 }
 0x10d   :  { %v1626_v61 = vpack.c.bf16 %v985_v57, %v984_v55  ;;  %v851_v63 = vmul.f32 %v2251_v15, %v601_v59  ;;  %v883_v0 = vmul.f32 %v2251_v15, %v729_v60  ;;  %v603_v1 = vpop.f32.mrb[9].mxu0  ;;  %v731_v2 = vpop.f32.mrb[9].mxu1 }
 0x10e   :  { %v1706_v62 = vpack.c.bf16 %v1017_v58, %v1016_v56  ;;  %v604_v3 = vpop.f32.mrb[10].mxu0  ;;  %v732_v4 = vpop.f32.mrb[10].mxu1 }
 0x10f   :  { %1778 = vst [vmem:[#allocation2 + $0x8] sm:$0xff] %v1626_v61   ;;  %v922_v5 = vadd.f32 %v2256_v17, %v851_v63  ;;  %v954_v6 = vadd.f32 %v2256_v17, %v883_v0  ;;  %v852_v7 = vmul.f32 %v2251_v15, %v604_v3  ;;  %v884_v8 = vmul.f32 %v2251_v15, %v732_v4  ;;  %v606_v9 = vpop.f32.mrb[11].mxu0  ;;  %v734_v10 = vpop.f32.mrb[11].mxu1 }
 0x110   :  { %1794 = vst [vmem:[#allocation2 + $0x88] sm:$0xff] %v1706_v62  }
 0x111   :  { %v923_v11 = vadd.f32 %v2256_v17, %v852_v7  ;;  %v955_v12 = vadd.f32 %v2256_v17, %v884_v8  ;;  %v986_v13 = vmax.f32 %v922_v5, 0.0  ;;  %v1018_v14 = vmax.f32 %v954_v6, 0.0 }
 0x113   :  { %v987_v16 = vmax.f32 %v923_v11, 0.0  ;;  %v1019_v18 = vmax.f32 %v955_v12, 0.0 }
 0x114   :  { %v609_v19 = vpop.f32.mrb[12].mxu0  ;;  %v737_v20 = vpop.f32.mrb[12].mxu1 }
 0x115   :  { %v1631_v21 = vpack.c.bf16 %v987_v16, %v986_v13  ;;  %v1711_v22 = vpack.c.bf16 %v1019_v18, %v1018_v14  ;;  %v853_v23 = vmul.f32 %v2251_v15, %v609_v19  ;;  %v885_v24 = vmul.f32 %v2251_v15, %v737_v20  ;;  %v611_v25 = vpop.f32.mrb[13].mxu0  ;;  %v739_v26 = vpop.f32.mrb[13].mxu1 }
 0x116   :  { %v612_v27 = vpop.f32.mrb[14].mxu0  ;;  %v740_v28 = vpop.f32.mrb[14].mxu1 }
 0x117   :  { %1779 = vst [vmem:[#allocation2 + $0x10] sm:$0xff] %v1631_v21   ;;  %1795 = vst [vmem:[#allocation2 + $0x90] sm:$0xff] %v1711_v22   ;;  %v924_v29 = vadd.f32 %v2256_v17, %v853_v23  ;;  %v956_v30 = vadd.f32 %v2256_v17, %v885_v24  ;;  %v854_v31 = vmul.f32 %v2251_v15, %v612_v27  ;;  %v614_v33 = vpop.f32.mrb[15].mxu0  ;;  %v742_v34 = vpop.f32.mrb[15].mxu1 }
 0x118   :  { %v886_v32 = vmul.f32 %v2251_v15, %v740_v28 }
 0x119   :  { %v925_v35 = vadd.f32 %v2256_v17, %v854_v31  ;;  %v988_v37 = vmax.f32 %v924_v29, 0.0  ;;  %v1020_v38 = vmax.f32 %v956_v30, 0.0 }
 0x11a   :  { %v957_v36 = vadd.f32 %v2256_v17, %v886_v32 }
 0x11b   :  { %v989_v39 = vmax.f32 %v925_v35, 0.0 }
 0x11c   :  { %v1021_v40 = vmax.f32 %v957_v36, 0.0  ;;  %v617_v41 = vpop.f32.mrb[16].mxu0  ;;  %v745_v42 = vpop.f32.mrb[16].mxu1 }
 0x11d   :  { %v1636_v43 = vpack.c.bf16 %v989_v39, %v988_v37  ;;  %v855_v45 = vmul.f32 %v2251_v15, %v617_v41  ;;  %v887_v46 = vmul.f32 %v2251_v15, %v745_v42  ;;  %v619_v47 = vpop.f32.mrb[17].mxu0  ;;  %v747_v48 = vpop.f32.mrb[17].mxu1 }
 0x11e   :  { %v1716_v44 = vpack.c.bf16 %v1021_v40, %v1020_v38  ;;  %v620_v49 = vpop.f32.mrb[18].mxu0  ;;  %v748_v50 = vpop.f32.mrb[18].mxu1 }
 0x11f   :  { %1780 = vst [vmem:[#allocation2 + $0x18] sm:$0xff] %v1636_v43   ;;  %v926_v51 = vadd.f32 %v2256_v17, %v855_v45  ;;  %v958_v52 = vadd.f32 %v2256_v17, %v887_v46  ;;  %v856_v53 = vmul.f32 %v2251_v15, %v620_v49  ;;  %v888_v54 = vmul.f32 %v2251_v15, %v748_v50  ;;  %v622_v55 = vpop.f32.mrb[19].mxu0  ;;  %v750_v56 = vpop.f32.mrb[19].mxu1 }
 0x120   :  { %1796 = vst [vmem:[#allocation2 + $0x98] sm:$0xff] %v1716_v44  }
 0x121   :  { %v927_v57 = vadd.f32 %v2256_v17, %v856_v53  ;;  %v959_v58 = vadd.f32 %v2256_v17, %v888_v54  ;;  %v990_v59 = vmax.f32 %v926_v51, 0.0  ;;  %v1022_v60 = vmax.f32 %v958_v52, 0.0 }
 0x123   :  { %v991_v61 = vmax.f32 %v927_v57, 0.0  ;;  %v1023_v62 = vmax.f32 %v959_v58, 0.0 }
 0x124   :  { %v625_v63 = vpop.f32.mrb[20].mxu0  ;;  %v753_v0 = vpop.f32.mrb[20].mxu1 }
 0x125   :  { %v1641_v1 = vpack.c.bf16 %v991_v61, %v990_v59  ;;  %v1721_v2 = vpack.c.bf16 %v1023_v62, %v1022_v60  ;;  %v857_v3 = vmul.f32 %v2251_v15, %v625_v63  ;;  %v889_v4 = vmul.f32 %v2251_v15, %v753_v0  ;;  %v627_v5 = vpop.f32.mrb[21].mxu0  ;;  %v755_v6 = vpop.f32.mrb[21].mxu1 }
 0x126   :  { %v628_v7 = vpop.f32.mrb[22].mxu0  ;;  %v756_v8 = vpop.f32.mrb[22].mxu1 }
 0x127   :  { %1781 = vst [vmem:[#allocation2 + $0x20] sm:$0xff] %v1641_v1   ;;  %1797 = vst [vmem:[#allocation2 + $0xa0] sm:$0xff] %v1721_v2   ;;  %v928_v9 = vadd.f32 %v2256_v17, %v857_v3  ;;  %v960_v10 = vadd.f32 %v2256_v17, %v889_v4  ;;  %v858_v11 = vmul.f32 %v2251_v15, %v628_v7  ;;  %v630_v13 = vpop.f32.mrb[23].mxu0  ;;  %v758_v14 = vpop.f32.mrb[23].mxu1 }
 0x128   :  { %v890_v12 = vmul.f32 %v2251_v15, %v756_v8 }
 0x129   :  { %v929_v16 = vadd.f32 %v2256_v17, %v858_v11  ;;  %v992_v19 = vmax.f32 %v928_v9, 0.0  ;;  %v1024_v20 = vmax.f32 %v960_v10, 0.0 }
 0x12a   :  { %v961_v18 = vadd.f32 %v2256_v17, %v890_v12 }
 0x12b   :  { %v993_v21 = vmax.f32 %v929_v16, 0.0 }
 0x12c   :  { %v1025_v22 = vmax.f32 %v961_v18, 0.0  ;;  %v633_v23 = vpop.f32.mrb[24].mxu0  ;;  %v761_v24 = vpop.f32.mrb[24].mxu1 }
 0x12d   :  { %v1646_v25 = vpack.c.bf16 %v993_v21, %v992_v19  ;;  %v859_v27 = vmul.f32 %v2251_v15, %v633_v23  ;;  %v891_v28 = vmul.f32 %v2251_v15, %v761_v24  ;;  %v635_v29 = vpop.f32.mrb[25].mxu0  ;;  %v763_v30 = vpop.f32.mrb[25].mxu1 }
 0x12e   :  { %v1726_v26 = vpack.c.bf16 %v1025_v22, %v1024_v20  ;;  %v636_v31 = vpop.f32.mrb[26].mxu0  ;;  %v764_v32 = vpop.f32.mrb[26].mxu1 }
 0x12f   :  { %1782 = vst [vmem:[#allocation2 + $0x28] sm:$0xff] %v1646_v25   ;;  %v930_v33 = vadd.f32 %v2256_v17, %v859_v27  ;;  %v962_v34 = vadd.f32 %v2256_v17, %v891_v28  ;;  %v860_v35 = vmul.f32 %v2251_v15, %v636_v31  ;;  %v892_v36 = vmul.f32 %v2251_v15, %v764_v32  ;;  %v638_v37 = vpop.f32.mrb[27].mxu0  ;;  %v766_v38 = vpop.f32.mrb[27].mxu1 }
 0x130   :  { %1798 = vst [vmem:[#allocation2 + $0xa8] sm:$0xff] %v1726_v26  }
 0x131   :  { %v931_v39 = vadd.f32 %v2256_v17, %v860_v35  ;;  %v963_v40 = vadd.f32 %v2256_v17, %v892_v36  ;;  %v994_v41 = vmax.f32 %v930_v33, 0.0  ;;  %v1026_v42 = vmax.f32 %v962_v34, 0.0 }
 0x133   :  { %v995_v43 = vmax.f32 %v931_v39, 0.0  ;;  %v1027_v44 = vmax.f32 %v963_v40, 0.0 }
 0x134   :  { %v641_v45 = vpop.f32.mrb[28].mxu0  ;;  %v769_v46 = vpop.f32.mrb[28].mxu1 }
 0x135   :  { %v1651_v47 = vpack.c.bf16 %v995_v43, %v994_v41  ;;  %v1731_v48 = vpack.c.bf16 %v1027_v44, %v1026_v42  ;;  %v861_v49 = vmul.f32 %v2251_v15, %v641_v45  ;;  %v893_v50 = vmul.f32 %v2251_v15, %v769_v46  ;;  %v643_v51 = vpop.f32.mrb[29].mxu0  ;;  %v771_v52 = vpop.f32.mrb[29].mxu1 }
 0x136   :  { %v644_v53 = vpop.f32.mrb[30].mxu0  ;;  %v772_v54 = vpop.f32.mrb[30].mxu1 }
 0x137   :  { %1783 = vst [vmem:[#allocation2 + $0x30] sm:$0xff] %v1651_v47   ;;  %1799 = vst [vmem:[#allocation2 + $0xb0] sm:$0xff] %v1731_v48   ;;  %v932_v55 = vadd.f32 %v2256_v17, %v861_v49  ;;  %v964_v56 = vadd.f32 %v2256_v17, %v893_v50  ;;  %v862_v57 = vmul.f32 %v2251_v15, %v644_v53  ;;  %v646_v59 = vpop.f32.mrb[31].mxu0  ;;  %v774_v60 = vpop.f32.mrb[31].mxu1 }
 0x138   :  { %v894_v58 = vmul.f32 %v2251_v15, %v772_v54 }
 0x139   :  { %v933_v61 = vadd.f32 %v2256_v17, %v862_v57  ;;  %v996_v63 = vmax.f32 %v932_v55, 0.0  ;;  %v1028_v0 = vmax.f32 %v964_v56, 0.0 }
 0x13a   :  { %v965_v62 = vadd.f32 %v2256_v17, %v894_v58 }
 0x13b   :  { %v997_v1 = vmax.f32 %v933_v61, 0.0 }
 0x13c   :  { %v1029_v2 = vmax.f32 %v965_v62, 0.0  ;;  %v649_v3 = vpop.f32.mrb[32].mxu0  ;;  %v777_v4 = vpop.f32.mrb[32].mxu1 }
 0x13d   :  { %v1656_v5 = vpack.c.bf16 %v997_v1, %v996_v63  ;;  %v863_v7 = vmul.f32 %v2251_v15, %v649_v3  ;;  %v895_v8 = vmul.f32 %v2251_v15, %v777_v4  ;;  %v651_v9 = vpop.f32.mrb[33].mxu0  ;;  %v779_v10 = vpop.f32.mrb[33].mxu1 }
 0x13e   :  { %v1736_v6 = vpack.c.bf16 %v1029_v2, %v1028_v0  ;;  %v652_v11 = vpop.f32.mrb[34].mxu0  ;;  %v780_v12 = vpop.f32.mrb[34].mxu1 }
 0x13f   :  { %1784 = vst [vmem:[#allocation2 + $0x38] sm:$0xff] %v1656_v5   ;;  %v934_v13 = vadd.f32 %v2256_v17, %v863_v7  ;;  %v966_v14 = vadd.f32 %v2256_v17, %v895_v8  ;;  %v864_v16 = vmul.f32 %v2251_v15, %v652_v11  ;;  %v896_v18 = vmul.f32 %v2251_v15, %v780_v12  ;;  %v654_v19 = vpop.f32.mrb[35].mxu0  ;;  %v782_v20 = vpop.f32.mrb[35].mxu1 }
 0x140   :  { %1800 = vst [vmem:[#allocation2 + $0xb8] sm:$0xff] %v1736_v6  }
 0x141   :  { %v935_v21 = vadd.f32 %v2256_v17, %v864_v16  ;;  %v967_v22 = vadd.f32 %v2256_v17, %v896_v18  ;;  %v998_v23 = vmax.f32 %v934_v13, 0.0  ;;  %v1030_v24 = vmax.f32 %v966_v14, 0.0 }
 0x143   :  { %v999_v25 = vmax.f32 %v935_v21, 0.0  ;;  %v1031_v26 = vmax.f32 %v967_v22, 0.0 }
 0x144   :  { %v657_v27 = vpop.f32.mrb[36].mxu0  ;;  %v785_v28 = vpop.f32.mrb[36].mxu1 }
 0x145   :  { %v1661_v29 = vpack.c.bf16 %v999_v25, %v998_v23  ;;  %v1741_v30 = vpack.c.bf16 %v1031_v26, %v1030_v24  ;;  %v865_v31 = vmul.f32 %v2251_v15, %v657_v27  ;;  %v897_v32 = vmul.f32 %v2251_v15, %v785_v28  ;;  %v659_v33 = vpop.f32.mrb[37].mxu0  ;;  %v787_v34 = vpop.f32.mrb[37].mxu1 }
 0x146   :  { %v660_v35 = vpop.f32.mrb[38].mxu0  ;;  %v788_v36 = vpop.f32.mrb[38].mxu1 }
 0x147   :  { %1785 = vst [vmem:[#allocation2 + $0x40] sm:$0xff] %v1661_v29   ;;  %1801 = vst [vmem:[#allocation2 + $0xc0] sm:$0xff] %v1741_v30   ;;  %v936_v37 = vadd.f32 %v2256_v17, %v865_v31  ;;  %v968_v38 = vadd.f32 %v2256_v17, %v897_v32  ;;  %v866_v39 = vmul.f32 %v2251_v15, %v660_v35  ;;  %v662_v41 = vpop.f32.mrb[39].mxu0  ;;  %v790_v42 = vpop.f32.mrb[39].mxu1 }
 0x148   :  { %v898_v40 = vmul.f32 %v2251_v15, %v788_v36 }
 0x149   :  { %v937_v43 = vadd.f32 %v2256_v17, %v866_v39  ;;  %v1000_v45 = vmax.f32 %v936_v37, 0.0  ;;  %v1032_v46 = vmax.f32 %v968_v38, 0.0 }
 0x14a   :  { %v969_v44 = vadd.f32 %v2256_v17, %v898_v40 }
 0x14b   :  { %v1001_v47 = vmax.f32 %v937_v43, 0.0 }
 0x14c   :  { %v1033_v48 = vmax.f32 %v969_v44, 0.0  ;;  %v665_v49 = vpop.f32.mrb[40].mxu0  ;;  %v793_v50 = vpop.f32.mrb[40].mxu1 }
 0x14d   :  { %v1666_v51 = vpack.c.bf16 %v1001_v47, %v1000_v45  ;;  %v867_v53 = vmul.f32 %v2251_v15, %v665_v49  ;;  %v899_v54 = vmul.f32 %v2251_v15, %v793_v50  ;;  %v667_v55 = vpop.f32.mrb[41].mxu0  ;;  %v795_v56 = vpop.f32.mrb[41].mxu1 }
 0x14e   :  { %v1746_v52 = vpack.c.bf16 %v1033_v48, %v1032_v46  ;;  %v668_v57 = vpop.f32.mrb[42].mxu0  ;;  %v796_v58 = vpop.f32.mrb[42].mxu1 }
 0x14f   :  { %1786 = vst [vmem:[#allocation2 + $0x48] sm:$0xff] %v1666_v51   ;;  %v938_v59 = vadd.f32 %v2256_v17, %v867_v53  ;;  %v970_v60 = vadd.f32 %v2256_v17, %v899_v54  ;;  %v868_v61 = vmul.f32 %v2251_v15, %v668_v57  ;;  %v900_v62 = vmul.f32 %v2251_v15, %v796_v58  ;;  %v670_v63 = vpop.f32.mrb[43].mxu0  ;;  %v798_v0 = vpop.f32.mrb[43].mxu1 }
 0x150   :  { %1802 = vst [vmem:[#allocation2 + $0xc8] sm:$0xff] %v1746_v52  }
 0x151   :  { %v939_v1 = vadd.f32 %v2256_v17, %v868_v61  ;;  %v971_v2 = vadd.f32 %v2256_v17, %v900_v62  ;;  %v1002_v3 = vmax.f32 %v938_v59, 0.0  ;;  %v1034_v4 = vmax.f32 %v970_v60, 0.0 }
 0x153   :  { %v1003_v5 = vmax.f32 %v939_v1, 0.0  ;;  %v1035_v6 = vmax.f32 %v971_v2, 0.0 }
 0x154   :  { %v673_v7 = vpop.f32.mrb[44].mxu0  ;;  %v801_v8 = vpop.f32.mrb[44].mxu1 }
 0x155   :  { %v1671_v9 = vpack.c.bf16 %v1003_v5, %v1002_v3  ;;  %v1751_v10 = vpack.c.bf16 %v1035_v6, %v1034_v4  ;;  %v869_v11 = vmul.f32 %v2251_v15, %v673_v7  ;;  %v901_v12 = vmul.f32 %v2251_v15, %v801_v8  ;;  %v675_v13 = vpop.f32.mrb[45].mxu0  ;;  %v803_v14 = vpop.f32.mrb[45].mxu1 }
 0x156   :  { %v676_v16 = vpop.f32.mrb[46].mxu0  ;;  %v804_v18 = vpop.f32.mrb[46].mxu1 }
 0x157   :  { %1787 = vst [vmem:[#allocation2 + $0x50] sm:$0xff] %v1671_v9   ;;  %1803 = vst [vmem:[#allocation2 + $0xd0] sm:$0xff] %v1751_v10   ;;  %v940_v19 = vadd.f32 %v2256_v17, %v869_v11  ;;  %v972_v20 = vadd.f32 %v2256_v17, %v901_v12  ;;  %v870_v21 = vmul.f32 %v2251_v15, %v676_v16  ;;  %v678_v23 = vpop.f32.mrb[47].mxu0  ;;  %v806_v24 = vpop.f32.mrb[47].mxu1 }
 0x158   :  { %v902_v22 = vmul.f32 %v2251_v15, %v804_v18 }
 0x159   :  { %v941_v25 = vadd.f32 %v2256_v17, %v870_v21  ;;  %v1004_v27 = vmax.f32 %v940_v19, 0.0  ;;  %v1036_v28 = vmax.f32 %v972_v20, 0.0 }
 0x15a   :  { %v973_v26 = vadd.f32 %v2256_v17, %v902_v22 }
 0x15b   :  { %v1005_v29 = vmax.f32 %v941_v25, 0.0 }
 0x15c   :  { %v1037_v30 = vmax.f32 %v973_v26, 0.0  ;;  %v681_v31 = vpop.f32.mrb[48].mxu0  ;;  %v809_v32 = vpop.f32.mrb[48].mxu1 }
 0x15d   :  { %v1676_v33 = vpack.c.bf16 %v1005_v29, %v1004_v27  ;;  %v871_v35 = vmul.f32 %v2251_v15, %v681_v31  ;;  %v903_v36 = vmul.f32 %v2251_v15, %v809_v32  ;;  %v683_v37 = vpop.f32.mrb[49].mxu0  ;;  %v811_v38 = vpop.f32.mrb[49].mxu1 }
 0x15e   :  { %v1756_v34 = vpack.c.bf16 %v1037_v30, %v1036_v28  ;;  %v684_v39 = vpop.f32.mrb[50].mxu0  ;;  %v812_v40 = vpop.f32.mrb[50].mxu1 }
 0x15f   :  { %1788 = vst [vmem:[#allocation2 + $0x58] sm:$0xff] %v1676_v33   ;;  %v942_v41 = vadd.f32 %v2256_v17, %v871_v35  ;;  %v974_v42 = vadd.f32 %v2256_v17, %v903_v36  ;;  %v872_v43 = vmul.f32 %v2251_v15, %v684_v39  ;;  %v904_v44 = vmul.f32 %v2251_v15, %v812_v40  ;;  %v686_v45 = vpop.f32.mrb[51].mxu0  ;;  %v814_v46 = vpop.f32.mrb[51].mxu1 }
 0x160   :  { %1804 = vst [vmem:[#allocation2 + $0xd8] sm:$0xff] %v1756_v34  }
 0x161   :  { %v943_v47 = vadd.f32 %v2256_v17, %v872_v43  ;;  %v975_v48 = vadd.f32 %v2256_v17, %v904_v44  ;;  %v1006_v49 = vmax.f32 %v942_v41, 0.0  ;;  %v1038_v50 = vmax.f32 %v974_v42, 0.0 }
 0x163   :  { %v1007_v51 = vmax.f32 %v943_v47, 0.0  ;;  %v1039_v52 = vmax.f32 %v975_v48, 0.0 }
 0x164   :  { %v689_v53 = vpop.f32.mrb[52].mxu0  ;;  %v817_v54 = vpop.f32.mrb[52].mxu1 }
 0x165   :  { %v1681_v55 = vpack.c.bf16 %v1007_v51, %v1006_v49  ;;  %v1761_v56 = vpack.c.bf16 %v1039_v52, %v1038_v50  ;;  %v873_v57 = vmul.f32 %v2251_v15, %v689_v53  ;;  %v905_v58 = vmul.f32 %v2251_v15, %v817_v54  ;;  %v691_v59 = vpop.f32.mrb[53].mxu0  ;;  %v819_v60 = vpop.f32.mrb[53].mxu1 }
 0x166   :  { %v692_v61 = vpop.f32.mrb[54].mxu0  ;;  %v820_v62 = vpop.f32.mrb[54].mxu1 }
 0x167   :  { %1789 = vst [vmem:[#allocation2 + $0x60] sm:$0xff] %v1681_v55   ;;  %1805 = vst [vmem:[#allocation2 + $0xe0] sm:$0xff] %v1761_v56   ;;  %v944_v63 = vadd.f32 %v2256_v17, %v873_v57  ;;  %v976_v0 = vadd.f32 %v2256_v17, %v905_v58  ;;  %v874_v1 = vmul.f32 %v2251_v15, %v692_v61  ;;  %v694_v3 = vpop.f32.mrb[55].mxu0  ;;  %v822_v4 = vpop.f32.mrb[55].mxu1 }
 0x168   :  { %v906_v2 = vmul.f32 %v2251_v15, %v820_v62 }
 0x169   :  { %v945_v5 = vadd.f32 %v2256_v17, %v874_v1  ;;  %v1008_v7 = vmax.f32 %v944_v63, 0.0  ;;  %v1040_v8 = vmax.f32 %v976_v0, 0.0 }
 0x16a   :  { %v977_v6 = vadd.f32 %v2256_v17, %v906_v2 }
 0x16b   :  { %v1009_v9 = vmax.f32 %v945_v5, 0.0 }
 0x16c   :  { %v1041_v10 = vmax.f32 %v977_v6, 0.0  ;;  %v697_v11 = vpop.f32.mrb[56].mxu0  ;;  %v825_v12 = vpop.f32.mrb[56].mxu1 }
 0x16d   :  { %v1686_v13 = vpack.c.bf16 %v1009_v9, %v1008_v7  ;;  %v875_v16 = vmul.f32 %v2251_v15, %v697_v11  ;;  %v907_v18 = vmul.f32 %v2251_v15, %v825_v12  ;;  %v699_v19 = vpop.f32.mrb[57].mxu0  ;;  %v827_v20 = vpop.f32.mrb[57].mxu1 }
 0x16e   :  { %v1766_v14 = vpack.c.bf16 %v1041_v10, %v1040_v8  ;;  %v700_v21 = vpop.f32.mrb[58].mxu0  ;;  %v828_v22 = vpop.f32.mrb[58].mxu1 }
 0x16f   :  { %1790 = vst [vmem:[#allocation2 + $0x68] sm:$0xff] %v1686_v13   ;;  %v946_v23 = vadd.f32 %v2256_v17, %v875_v16  ;;  %v978_v24 = vadd.f32 %v2256_v17, %v907_v18  ;;  %v876_v25 = vmul.f32 %v2251_v15, %v700_v21  ;;  %v908_v26 = vmul.f32 %v2251_v15, %v828_v22  ;;  %v702_v27 = vpop.f32.mrb[59].mxu0  ;;  %v830_v28 = vpop.f32.mrb[59].mxu1 }
 0x170   :  { %1806 = vst [vmem:[#allocation2 + $0xe8] sm:$0xff] %v1766_v14  }
 0x171   :  { %v947_v29 = vadd.f32 %v2256_v17, %v876_v25  ;;  %v979_v30 = vadd.f32 %v2256_v17, %v908_v26  ;;  %v1010_v31 = vmax.f32 %v946_v23, 0.0  ;;  %v1042_v32 = vmax.f32 %v978_v24, 0.0 }
 0x173   :  { %v1011_v33 = vmax.f32 %v947_v29, 0.0  ;;  %v1043_v34 = vmax.f32 %v979_v30, 0.0 }
 0x174   :  { %v705_v35 = vpop.f32.mrb[60].mxu0  ;;  %v833_v36 = vpop.f32.mrb[60].mxu1 }
 0x175   :  { %v1691_v37 = vpack.c.bf16 %v1011_v33, %v1010_v31  ;;  %v1771_v38 = vpack.c.bf16 %v1043_v34, %v1042_v32  ;;  %v877_v39 = vmul.f32 %v2251_v15, %v705_v35  ;;  %v909_v40 = vmul.f32 %v2251_v15, %v833_v36  ;;  %v707_v41 = vpop.f32.mrb[61].mxu0  ;;  %v835_v42 = vpop.f32.mrb[61].mxu1 }
 0x176   :  { %v708_v43 = vpop.f32.mrb[62].mxu0  ;;  %v836_v44 = vpop.f32.mrb[62].mxu1 }
 0x177   :  { %1791 = vst [vmem:[#allocation2 + $0x70] sm:$0xff] %v1691_v37   ;;  %1807 = vst [vmem:[#allocation2 + $0xf0] sm:$0xff] %v1771_v38   ;;  %v948_v45 = vadd.f32 %v2256_v17, %v877_v39  ;;  %v980_v46 = vadd.f32 %v2256_v17, %v909_v40  ;;  %v878_v47 = vmul.f32 %v2251_v15, %v708_v43  ;;  %v710_v49 = vpop.f32.mrb[63].mxu0  ;;  %v838_v50 = vpop.f32.mrb[63].mxu1 }
 0x178   :  { %v910_v48 = vmul.f32 %v2251_v15, %v836_v44 }
 0x179   :  { %v949_v51 = vadd.f32 %v2256_v17, %v878_v47  ;;  %v1012_v53 = vmax.f32 %v948_v45, 0.0  ;;  %v1044_v54 = vmax.f32 %v980_v46, 0.0 }
 0x17a   :  { %v981_v52 = vadd.f32 %v2256_v17, %v910_v48 }
 0x17b   :  { %v1013_v55 = vmax.f32 %v949_v51, 0.0 }
 0x17c   :  { %v1045_v56 = vmax.f32 %v981_v52, 0.0 }
 0x17d   :  { %v1696_v57 = vpack.c.bf16 %v1013_v55, %v1012_v53 }
 0x17e   :  { %v1776_v58 = vpack.c.bf16 %v1045_v56, %v1044_v54 }
 0x17f   :  { %1792 = vst [vmem:[#allocation2 + $0x78] sm:$0xff] %v1696_v57  }
 0x180   :  { %1808 = vst [vmem:[#allocation2 + $0xf8] sm:$0xff] %v1776_v58  }
 0x181   :  { %1951 = shalt.err (!%p1948_p4)
}
 0x182   :  { %s1952_s8 = scalar_lea.hbm %s2402_s4, 4096 }
 0x183   :  { %p1953_p5 = scmp.ne.s32.totalorder %s2402_s4, %s1952_s8  ;;  %p1956_p6 = scmp.lt.u32.totalorder %s1952_s8, %s2402_s4 }
 0x185   :  { %p1958_p7 = pnand %p1956_p6, %p1953_p5 }
 0x187   :  { %1961 = shalt.err (!%p1958_p7)
}
 0x188   :  { %s1967_s13 = smov 64   ;;  %s1968_s14 = smov 4  }
 0x189   :  { %1377 = dma.vmem_to_hbm [thread:$0]  %s1372_s2, 4096, %s2402_s4, [#allocation3], %s1967_s13, %s1967_s13, %s1968_s14  }
 0x18a   :  { %1962 = dma.done.wait [#allocation3], 4096  }
 0x18b   :  { %1963 = vsyncadd [#allocation3], 4294963200 }
 0x18c   :  { %1381 = vsyncpa [#allocation3], 1 }

</bundles_post_ra>
